<compile_context>
chip_gen: v5e
topology: v5e:2x2
jax: 0.10.0
libtpu: 0.0.40
codegen_flags: <defaults>
</compile_context>

<pallas_src>
import jax
import jax.numpy as jnp
from jax.experimental import pallas as pl
from jax.experimental.pallas import tpu as pltpu


# ---------------------------------------------------------------------------
# Pallas kernels
# ---------------------------------------------------------------------------

def _conv_stats_kernel(p_ref, w_ref, stats_ref):
    """GEMM for one M-tile; emit per-tile per-channel (sum, sumsq) rows.

    stats tile layout (8, Cout_pad): row 0 = sum over tile rows,
    row 1 = sum of squares, rows 2..7 = 0 (padding for (8,128) alignment).
    Zero-padded M rows contribute exactly 0 to both sums, so padding is
    harmless as long as the wrapper divides by the true M.
    """
    acc = jnp.dot(p_ref[...], w_ref[...], preferred_element_type=jnp.float32)
    s = jnp.sum(acc, axis=0, keepdims=True)            # (1, CP)
    ss = jnp.sum(acc * acc, axis=0, keepdims=True)     # (1, CP)
    rows = jax.lax.broadcasted_iota(jnp.int32, stats_ref.shape, 0)
    stats_ref[...] = jnp.where(rows == 0, s, 0.0) + jnp.where(rows == 1, ss, 0.0)


def _conv_norm_kernel(p_ref, w_ref, scale_ref, shift_ref, o_ref):
    """Recompute the GEMM tile and apply the fused BatchNorm affine."""
    acc = jnp.dot(p_ref[...], w_ref[...], preferred_element_type=jnp.float32)
    o_ref[...] = acc * scale_ref[...] + shift_ref[...]


# ---------------------------------------------------------------------------
# Wrapper
# ---------------------------------------------------------------------------

def deconvolution_layer_forward(x, weight, bias, gamma, beta, *,
                                kernel_size, eps=1e-5):
    """ConvTranspose3d(stride=1, padding=0) -> BatchNorm3d (training stats).

    x:      (N, Cin, D, H, W)
    weight: (Cin, Cout, k, k, k)   -- PyTorch ConvTranspose3d layout
    bias:   (Cout,)  -- mathematically cancelled by the BN mean subtraction
                        (training mode), so it is not applied.
    gamma, beta: (Cout,) BatchNorm affine parameters.
    Returns (N, Cout, D+k-1, H+k-1, W+k-1) float32.
    """
    del bias  # exactly cancelled by BN mean subtraction; dead compute.

    N, Cin, D, H, W = x.shape
    Cout = weight.shape[1]
    k = kernel_size
    Do, Ho, Wo = D + k - 1, H + k - 1, W + k - 1
    K = Cin * k * k * k
    CP = 128 * ((Cout + 127) // 128)          # lane-dense padded channel count
    M = N * Do * Ho * Wo

    # bf16 operands for the MXU (f32 accumulation); halves patch HBM bytes.
    xb = x.astype(jnp.bfloat16)
    # Full (k-1) zero padding on every spatial side: transposed conv with
    # stride=1 / pad=0 is a VALID correlation of the padded input with the
    # flipped, channel-swapped kernel.
    xp = jnp.pad(xb, ((0, 0), (0, 0),
                      (k - 1, k - 1), (k - 1, k - 1), (k - 1, k - 1)))

    # im2col (bf16): rows ordered (n, do, ho, wo); columns ordered (ci, taps).
    # TODO(synk): replace the host-side im2col with an in-kernel implicit GEMM
    # (k^3 shifted-window DMAs accumulated in a VMEM scratch) to remove the
    # k^3 HBM blow-up for large volumes.
    cols = []
    for kd in range(k):
        for kh in range(k):
            for kw in range(k):
                cols.append(xp[:, :, kd:kd + Do, kh:kh + Ho, kw:kw + Wo])
    p = jnp.stack(cols, axis=0)                    # (k^3, N, Cin, Do, Ho, Wo)
    p = jnp.transpose(p, (1, 3, 4, 5, 2, 0))       # (N, Do, Ho, Wo, Cin, k^3)
    patches = p.reshape(M, K)                      # (M, K) bf16

    # Effective GEMM weight: w_mat[ci*k^3 + tap, co] = W[ci, co, flipped tap],
    # zero-padded on the lane (Cout) axis to CP.
    w_flip = weight[:, :, ::-1, ::-1, ::-1]                     # (Cin, Cout, k,k,k)
    w_mat = jnp.transpose(w_flip, (0, 2, 3, 4, 1)).reshape(K, Cout)
    w_mat = jnp.pad(w_mat, ((0, 0), (0, CP - Cout))).astype(jnp.bfloat16)

    gamma_p = jnp.pad(gamma.astype(jnp.float32), (0, CP - Cout))
    beta_p = jnp.pad(beta.astype(jnp.float32), (0, CP - Cout))

    # --- generation-aware tile size & VMEM limit ---------------------------
    vmem_cap = 64 * 1024 * 1024                      # conservative (v7x per-TC)
    try:
        vmem_cap = int(pltpu.get_tpu_info().vmem_capacity_bytes)
    except Exception:
        pass
    vmem_limit = int(min(vmem_cap * 3 // 4, 96 * 1024 * 1024))
    vmem_budget = vmem_limit // 2                    # headroom for pipeline internals

    tm = 8
    for cand in (1024, 512, 256, 128, 64, 32, 16, 8):
        # Pass-2 footprint (the larger pass): double-buffered patches (bf16),
        # weights (bf16), scale/shift (f32), output (f32).
        need = (2 * cand * K * 2 + 2 * K * CP * 2 + 4 * CP * 4
                + 2 * cand * CP * 4)
        if need <= vmem_budget:
            tm = cand
            break
    grid_m = pl.cdiv(M, tm)
    m_pad = grid_m * tm
    if m_pad != M:
        patches = jnp.pad(patches, ((0, m_pad - M), (0, 0)))

    cparams = pltpu.CompilerParams(dimension_semantics=("parallel",),
                                   vmem_limit_bytes=vmem_limit)

    # --- pass 1: GEMM + per-tile partial BN statistics ----------------------
    stats = pl.pallas_call(
        _conv_stats_kernel,
        out_shape=jax.ShapeDtypeStruct((grid_m * 8, CP), jnp.float32),
        grid_spec=pltpu.PrefetchScalarGridSpec(
            num_scalar_prefetch=0,
            grid=(grid_m,),
            in_specs=[
                pl.BlockSpec((tm, K), lambda i: (i, 0)),
                pl.BlockSpec((K, CP), lambda i: (0, 0)),
            ],
            out_specs=pl.BlockSpec((8, CP), lambda i: (i, 0)),
        ),
        compiler_params=cparams,
    )(patches, w_mat)

    # Tiny reduction + affine folding in XLA (per review: stats epilogue only).
    stats = stats.reshape(grid_m, 8, CP)
    ch_sum = jnp.sum(stats[:, 0, :], axis=0)
    ch_ssq = jnp.sum(stats[:, 1, :], axis=0)
    inv_m = 1.0 / float(M)                           # true M, not padded M
    mean = ch_sum * inv_m
    var = ch_ssq * inv_m - mean * mean               # biased variance (train BN)
    inv_std = jax.lax.rsqrt(var + eps)
    scale = (gamma_p * inv_std).reshape(1, CP)
    shift = (beta_p - mean * gamma_p * inv_std).reshape(1, CP)

    # --- pass 2: recompute GEMM tile, apply fused BN scale/shift ------------
    out_pad = pl.pallas_call(
        _conv_norm_kernel,
        out_shape=jax.ShapeDtypeStruct((m_pad, CP), jnp.float32),
        grid_spec=pltpu.PrefetchScalarGridSpec(
            num_scalar_prefetch=0,
            grid=(grid_m,),
            in_specs=[
                pl.BlockSpec((tm, K), lambda i: (i, 0)),
                pl.BlockSpec((K, CP), lambda i: (0, 0)),
                pl.BlockSpec((1, CP), lambda i: (0, 0)),
                pl.BlockSpec((1, CP), lambda i: (0, 0)),
            ],
            out_specs=pl.BlockSpec((tm, CP), lambda i: (i, 0)),
        ),
        compiler_params=cparams,
    )(patches, w_mat, scale, shift)

    # acti_func=None (module default) -> no activation; no dropout in forward().
    out = out_pad[:M, :Cout].reshape(N, Do, Ho, Wo, Cout)
    # TODO(synk): fold this channels-last -> NCDHW transpose into the kernel
    # epilogue (or keep a channels-last consumer) to save one HBM pass.
    return jnp.transpose(out, (0, 4, 1, 2, 3))


# ---------------------------------------------------------------------------
# Pure-JAX reference (direct scatter-form ConvTranspose3d + training BN)
# ---------------------------------------------------------------------------

def _reference(x, weight, bias, gamma, beta, eps=1e-5):
    """Inputs rounded to bf16 (to mirror bf16 MXU operands); f32 accumulation."""
    N, Cin, D, H, W = x.shape
    Cout, k = weight.shape[1], weight.shape[2]
    xb = x.astype(jnp.bfloat16).astype(jnp.float32)
    wb = weight.astype(jnp.bfloat16).astype(jnp.float32)
    out = jnp.zeros((N, Cout, D + k - 1, H + k - 1, W + k - 1), jnp.float32)
    for a in range(k):
        for b in range(k):
            for c in range(k):
                contrib = jnp.einsum('nidhw,io->nodhw', xb, wb[:, :, a, b, c])
                out = out.at[:, :, a:a + D, b:b + H, c:c + W].add(contrib)
    out = out + bias.reshape(1, -1, 1, 1, 1)
    mean = jnp.mean(out, axis=(0, 2, 3, 4), keepdims=True)
    var = jnp.mean((out - mean) ** 2, axis=(0, 2, 3, 4), keepdims=True)
    out = (out - mean) * jax.lax.rsqrt(var + eps)
    return out * gamma.reshape(1, -1, 1, 1, 1) + beta.reshape(1, -1, 1, 1, 1)


if __name__ == "__main__":
    key = jax.random.PRNGKey(0)
    k_x, k_w, k_b, k_g, k_be = jax.random.split(key, 5)

    N, Cin, Cout, S, KS = 2, 4, 8, 8, 3     # (2, 4, 8, 8, 8) -> (2, 8, 10, 10, 10)
    x = jax.random.normal(k_x, (N, Cin, S, S, S), dtype=jnp.float32)

    # PyTorch ConvTranspose3d weight layout: (Cin, Cout, k, k, k).
    fan_in = Cout * KS * KS * KS
    bound = 1.0 / (fan_in ** 0.5)
    weight = jax.random.uniform(k_w, (Cin, Cout, KS, KS, KS),
                                minval=-bound, maxval=bound, dtype=jnp.float32)
    bias = jax.random.uniform(k_b, (Cout,), minval=-bound, maxval=bound,
                              dtype=jnp.float32)
    # BatchNorm affine parameters (perturbed from the 1/0 init to actually
    # exercise the affine path).
    gamma = 1.0 + 0.1 * jax.random.normal(k_g, (Cout,), dtype=jnp.float32)
    beta = 0.1 * jax.random.normal(k_be, (Cout,), dtype=jnp.float32)

    out = deconvolution_layer_forward(x, weight, bias, gamma, beta,
                                      kernel_size=KS)
    out = jax.block_until_ready(out)

    ref = _reference(x, weight, bias, gamma, beta)
    assert out.shape == (N, Cout, S + KS - 1, S + KS - 1, S + KS - 1), out.shape
    max_err = float(jnp.max(jnp.abs(out - ref)))
    assert jnp.allclose(out, ref, atol=2e-3, rtol=2e-3), max_err

    print("KERNEL_OK")
</pallas_src>

<mosaic_0001>
module attributes {stable_mosaic.version = 11 : i64} {
  func.func @_conv_stats_kernel(%arg0: i32, %arg1: memref<1024x108xbf16, #tpu.memory_space<vmem>>, %arg2: memref<108x128xbf16, #tpu.memory_space<vmem>>, %arg3: memref<8x128xf32, #tpu.memory_space<vmem>>) attributes {dimension_semantics = [#tpu.dimension_semantics<parallel>], iteration_bounds = array<i64: 2>, scalar_prefetch = 0 : i64, scratch_operands = 0 : i64, tpu.core_type = #tpu.core_type<tc>, window_params = [{transform_indices = @transform_0, window_bounds = array<i64: 1024, 108>}, {pipeline_mode = #tpu.pipeline_mode<synchronous>, transform_indices = @transform_1, window_bounds = array<i64: 108, 128>}, {transform_indices = @transform_2, window_bounds = array<i64: 8, 128>}]} {
    %c0 = arith.constant 0 : index
    %c0_0 = arith.constant 0 : index
    %0 = vector.load %arg1[%c0, %c0_0] : memref<1024x108xbf16, #tpu.memory_space<vmem>>, vector<1024x108xbf16>
    %c0_1 = arith.constant 0 : index
    %c0_2 = arith.constant 0 : index
    %1 = vector.load %arg2[%c0_1, %c0_2] : memref<108x128xbf16, #tpu.memory_space<vmem>>, vector<108x128xbf16>
    %cst = arith.constant dense<0.000000e+00> : vector<1024x128xf32>
    %2 = tpu.matmul %0, %1, %cst {dimension_numbers = #tpu.dot_dimension_numbers<[1], [0], [0], [1], [0, 0, 1, 1], [], []>} : vector<1024x108xbf16>, vector<108x128xbf16>, vector<1024x128xf32> -> vector<1024x128xf32>
    %cst_3 = arith.constant dense<0.000000e+00> : vector<128xf32>
    %3 = vector.multi_reduction <add>, %2, %cst_3 [0] : vector<1024x128xf32> to vector<128xf32>
    %4 = vector.shape_cast %3 : vector<128xf32> to vector<1x128xf32>
    %5 = arith.mulf %2, %2 : vector<1024x128xf32>
    %cst_4 = arith.constant dense<0.000000e+00> : vector<128xf32>
    %6 = vector.multi_reduction <add>, %5, %cst_4 [0] : vector<1024x128xf32> to vector<128xf32>
    %7 = vector.shape_cast %6 : vector<128xf32> to vector<1x128xf32>
    %8 = tpu.iota {dimensions = array<i32: 0>} : vector<8x128xi32>
    %c0_i32 = arith.constant 0 : i32
    %9 = vector.broadcast %c0_i32 : i32 to vector<8x128xi32>
    %10 = arith.cmpi eq, %8, %9 : vector<8x128xi32>
    %cst_5 = arith.constant 0.000000e+00 : f32
    %11 = vector.shape_cast %4 : vector<1x128xf32> to vector<1x128xf32>
    %12 = vector.broadcast %11 : vector<1x128xf32> to vector<8x128xf32>
    %13 = vector.broadcast %cst_5 : f32 to vector<8x128xf32>
    %14 = arith.select %10, %12, %13 : vector<8x128xi1>, vector<8x128xf32>
    %c1_i32 = arith.constant 1 : i32
    %15 = vector.broadcast %c1_i32 : i32 to vector<8x128xi32>
    %16 = arith.cmpi eq, %8, %15 : vector<8x128xi32>
    %cst_6 = arith.constant 0.000000e+00 : f32
    %17 = vector.shape_cast %7 : vector<1x128xf32> to vector<1x128xf32>
    %18 = vector.broadcast %17 : vector<1x128xf32> to vector<8x128xf32>
    %19 = vector.broadcast %cst_6 : f32 to vector<8x128xf32>
    %20 = arith.select %16, %18, %19 : vector<8x128xi1>, vector<8x128xf32>
    %21 = arith.addf %14, %20 : vector<8x128xf32>
    %c0_7 = arith.constant 0 : index
    %c0_8 = arith.constant 0 : index
    %22 = vector.load %arg3[%c0_7, %c0_8] : memref<8x128xf32, #tpu.memory_space<vmem>>, vector<8x128xf32>
    tpu.vector_store %arg3[%c0_7, %c0_8], %21 {strides = array<i32>} : memref<8x128xf32, #tpu.memory_space<vmem>>, vector<8x128xf32>,
    return
  }
  func.func @transform_0(%arg0: i32) -> (i32, i32) {
    %c0_i32 = arith.constant 0 : i32
    %c0_i32_0 = arith.constant 0 : i32
    return %arg0, %c0_i32 : i32, i32
  }
  func.func @transform_1(%arg0: i32) -> (i32, i32) {
    %c0_i32 = arith.constant 0 : i32
    %c0_i32_0 = arith.constant 0 : i32
    %c0_i32_1 = arith.constant 0 : i32
    return %c0_i32, %c0_i32_0 : i32, i32
  }
  func.func @transform_2(%arg0: i32) -> (i32, i32) {
    %c0_i32 = arith.constant 0 : i32
    %c0_i32_0 = arith.constant 0 : i32
    return %arg0, %c0_i32 : i32, i32
  }
}

</mosaic_0001>

<bundles_post_ra>
// kernel: tpu_custom_call.1
= control target key start
LH: loop header
LB: loop body
LE: loop exit
PB: predicated region body
PF: predicated region fallthrough
CT: control target
= control target key end

     0   :  { %7 = vsyncpa [#allocation3], 0  ;;  %s2868_s0 = inlined_call_operand.vmem [shape: bf16[2048,108], index: 0, kind: input, shape index: {}]   ;;  %s2869_s1 = inlined_call_operand.vmem [shape: bf16[108,128], index: 1, kind: input, shape index: {}]   ;;  %s2870_s2 = inlined_call_operand.hbm [shape: f32[16,128], index: 2, kind: output, shape index: {}]  }
   0x1   :  { %9 = vsyncpa [#allocation3 + $0x1], 0  ;;  %s2220_s9 = smov 0   ;;  %s2222_s10 = smov 0  }
   0x2   :  { %s2224_s11 = smov 0   ;;  %s2226_s12 = smov 0  }
   0x3 LB: > { %s2241_s13 = sadd.s32 4294967295, %s2203_s12   ;;  %s1651_s14 = sadd.s32 4294967294, %s2203_s12   ;;  %s2203_s12 = sphi %s2226_s12, %s2924_s12   ;;  %s2199_s11 = sphi %s2224_s11, %s2923_s11   ;;  %s2195_s10 = sphi %s2222_s10, %s2922_s10   ;;  %s2191_s9 = sphi %s2220_s9, %s2921_s9  }
   0x4   : > { %s2245_s15 = sadd.s32 1, %s2203_s12   ;;  %s69_s16 = sadd.s32 1, %s2199_s11 }
   0x5   : > { %s66_s17 = ssub.s32 %s2203_s12, %s2245_s15  ;;  %p79_p0 = scmp.ne.s32.totalorder %s2199_s11, %s2195_s10 }
   0x6   : > { %p67_p1 = scmp.eq.s32.totalorder %s66_s17, 0  ;;  %p80_p2 = scmp.eq.s32.totalorder %s2241_s13, 1 }
   0x7   : > { %p85_p3 = scmp.ne.s32.totalorder %s2195_s10, %s2191_s9  ;;  %p86_p4 = scmp.eq.s32.totalorder %s1651_s14, 1 }
   0x8   : > { %s2256_s18 = scalar_select %p67_p1, %s2199_s11, %s69_s16  }
   0x9   : > { %p2258_p5 = por %p80_p2, %p79_p0  ;;  %p2262_p6 = por %p86_p4, %p85_p3 }
   0xa   : > { %p1654_p7 = scmp.ge.s32.totalorder %s2203_s12, 1  ;;  %p116_p8 = scmp.lt.s32.totalorder %s2203_s12, 3 }
   0xc   : > { %p117_p9 = pnand %p1654_p7, %p116_p8 }
   0xe   : > { %120 = sbr.rel (%p117_p9) target bundleno = 638 (0x27e), region = 28 }
  0x13   : > { %v1940_v0 = vld [vmem:[%s2869_s1 + $0x30] sm:$0xf]  ;;  %v2080_v1 = vld [vmem:[%s2869_s1 + $0x30] sm:$0x30]  ;;  %vm841_vm0 = vcmask 1045504   ;;  %v2079_v4 = vld [vmem:[%s2869_s1 + $0x28] sm:$0xff] }
  0x14   : > { %v1941_v2 = vor.u32 %v2080_v1, %v1940_v0  ;;  %v2078_v5 = vld [vmem:[%s2869_s1 + $0x20] sm:$0xff]  ;;  %s1656_s29 = sshll.u32 %s2241_s13, 7  ;;  %v2077_v6 = vld [vmem:[%s2869_s1 + $0x18] sm:$0xff]  ;;  %v2076_v7 = vld [vmem:[%s2869_s1 + $0x10] sm:$0xff]  ;;  %vm648_vm1 = vcmask 883712   ;;  %s135_s23 = sand.u32 1, %s2195_s10  }
  0x15   : > { %p139_p10 = scmp.lt.s32.totalorder %s1656_s29, 255  ;;  %v2075_v8 = vld [vmem:[%s2869_s1 + $0x8] sm:$0xff]  ;;  %v2074_v9 = vld [vmem:[%s2869_s1] sm:$0xff]  ;;  %s1655_s24 = sshll.u32 %s135_s23, 3 }
  0x16   : > { %v843_v3 = vsel %vm841_vm0, %v1941_v2, 0  ;;  %s2007_s25 = sshll.u32 %s2241_s13, 3  ;;  %s1577_s13 = scalar_lea.sflag [#allocation3], %s135_s23 }
  0x17   : > { %846 = vmatpush.bf16.msra.mxu0 %v843_v3  ;;  %2081 = vmatpush.bf16.msra.mxu1 %v843_v3  ;;  %s2926_s29 = smov (!%p139_p10, %s1656_s29), 255  ;;  %s1587_s28 = scalar_lea.hbm %s2870_s2, %s2007_s25 }
  0x18   : > { %2082 = vmatpush.bf16.msra.mxu2 %v843_v3  ;;  %2083 = vmatpush.bf16.msra.mxu3 %v843_v3  ;;  %s1657_s8 = sshll.u32 %s2926_s29, 2  ;;  %s137_s29 = scalar_lea.vmem [#allocation2], %s1655_s24 }
  0x19   : > { %s2296_s22 = scalar_lea.vmem %s2868_s0, %s1657_s8  ;;  %s1589_s30 = sshll.u32 %s137_s29, 4  ;;  %s1590_s30 = int_to_ptr.vmem [resolvable:$true] %s1589_s30 }
  0x1a   : > { %v2010_v10 = vld [vmem:[%s2296_s22] sm:$0xff]  ;;  %v2011_v11 = vld [vmem:[%s2296_s22 + $0x8] sm:$0xff]  ;;  %v2012_v13 = vld [vmem:[%s2296_s22 + $0x10] sm:$0xff]  ;;  %s1591_s3 = sshll.u32 %s1587_s28, 4  ;;  %s2161_s8 = scalar_lea.hbm %s2870_s2, 16  ;;  %s1592_s3 = int_to_ptr.hbm [resolvable:$true] %s1591_s3 }
  0x1b   : > { %847 = vmatpush.bf16.msra.mxu0 %v2079_v4  ;;  %2084 = vmatpush.bf16.msra.mxu1 %v2079_v4  ;;  %v2026_v12 = vld [vmem:[%s2296_s22 + $0x80] sm:$0xff]  ;;  %v2027_v14 = vld [vmem:[%s2296_s22 + $0x88] sm:$0xff]  ;;  %v2013_v15 = vld [vmem:[%s2296_s22 + $0x18] sm:$0xff]  ;;  %s2155_s4 = sshra.s32 %s1592_s3, 4  ;;  %s2156_s4 = int_to_ptr.hbm [resolvable:$true] %s2155_s4 }
  0x1c   : > { %2085 = vmatpush.bf16.msra.mxu2 %v2079_v4  ;;  %2086 = vmatpush.bf16.msra.mxu3 %v2079_v4  ;;  %v2028_v16 = vld [vmem:[%s2296_s22 + $0x90] sm:$0xff]  ;;  %v2014_v17 = vld [vmem:[%s2296_s22 + $0x20] sm:$0xff]  ;;  %v2029_v18 = vld [vmem:[%s2296_s22 + $0x98] sm:$0xff]  ;;  %s2157_s5 = scalar_lea.hbm %s2156_s4, 8  ;;  %p2162_p0 = scmp.lt.s32.totalorder %s2156_s4, %s2870_s2 }
  0x1d   : > { %v2015_v19 = vld [vmem:[%s2296_s22 + $0x28] sm:$0xff]  ;;  %v2042_v20 = vld [vmem:[%s2296_s22 + $0x100] sm:$0xff]  ;;  %v2016_v22 = vld [vmem:[%s2296_s22 + $0x30] sm:$0xff]  ;;  %p2158_p11 = scmp.ne.s32.totalorder %s2156_s4, %s2157_s5  ;;  %p2163_p1 = scmp.lt.s32.totalorder %s2161_s8, %s2157_s5 }
  0x1e   : > { %v2030_v21 = vld [vmem:[%s2296_s22 + $0xa0] sm:$0xff]  ;;  %v2043_v23 = vld [vmem:[%s2296_s22 + $0x108] sm:$0xff]  ;;  %v2017_v25 = vld [vmem:[%s2296_s22 + $0x38] sm:$0xff] }
  0x1f   : > { %848 = vmatpush.bf16.msra.mxu0 %v2078_v5  ;;  %2087 = vmatpush.bf16.msra.mxu1 %v2078_v5  ;;  %v2031_v24 = vld [vmem:[%s2296_s22 + $0xa8] sm:$0xff]  ;;  %v2044_v26 = vld [vmem:[%s2296_s22 + $0x110] sm:$0xff]  ;;  %v2018_v28 = vld [vmem:[%s2296_s22 + $0x40] sm:$0xff]  ;;  %p2159_p12 = pnand %p2158_p11, %p2258_p5  ;;  %p2164_p2 = por %p2163_p1, %p2162_p0 }
  0x20   : > { %2088 = vmatpush.bf16.msra.mxu2 %v2078_v5  ;;  %2089 = vmatpush.bf16.msra.mxu3 %v2078_v5  ;;  %v2032_v27 = vld [vmem:[%s2296_s22 + $0xb0] sm:$0xff]  ;;  %v2045_v30 = vld [vmem:[%s2296_s22 + $0x118] sm:$0xff]  ;;  %v2019_v37 = vld [vmem:[%s2296_s22 + $0x48] sm:$0xff] }
  0x21   : > { %v2033_v35 = vld [vmem:[%s2296_s22 + $0xb8] sm:$0xff]  ;;  %v2046_v42 = vld [vmem:[%s2296_s22 + $0x120] sm:$0xff]  ;;  %v2020_v50 = vld [vmem:[%s2296_s22 + $0x50] sm:$0xff]  ;;  %p2160_p13 = pneg %p2159_p12 }
  0x22   : > { %v2058_v43 = vld [vmem:[%s2296_s22 + $0x180] sm:$0xff]  ;;  %v2047_v56 = vld [vmem:[%s2296_s22 + $0x128] sm:$0xff]  ;;  %v2021_v0 = vld [vmem:[%s2296_s22 + $0x58] sm:$0xff] }
  0x23   : > { %849 = vmatpush.bf16.msra.mxu0 %v2077_v6  ;;  %2090 = vmatpush.bf16.msra.mxu1 %v2077_v6  ;;  %v2034_v48 = vld [vmem:[%s2296_s22 + $0xc0] sm:$0xff]  ;;  %v2059_v57 = vld [vmem:[%s2296_s22 + $0x188] sm:$0xff]  ;;  %p2165_p3 = pnand %p2164_p2, %p2160_p13 }
  0x24   : > { %2091 = vmatpush.bf16.msra.mxu2 %v2077_v6  ;;  %2092 = vmatpush.bf16.msra.mxu3 %v2077_v6  ;;  %v2035_v62 = vld [vmem:[%s2296_s22 + $0xc8] sm:$0xff]  ;;  %v2048_v6 = vld [vmem:[%s2296_s22 + $0x130] sm:$0xff] }
  0x27   : > { %850 = vmatpush.bf16.msra.mxu0 %v2076_v7  ;;  %2093 = vmatpush.bf16.msra.mxu1 %v2076_v7 }
  0x28   : > { %2094 = vmatpush.bf16.msra.mxu2 %v2076_v7  ;;  %2095 = vmatpush.bf16.msra.mxu3 %v2076_v7  ;;  %v2060_v7 = vld [vmem:[%s2296_s22 + $0x190] sm:$0xff] }
  0x2b   : > { %851 = vmatpush.bf16.msra.mxu0 %v2075_v8  ;;  %2096 = vmatpush.bf16.msra.mxu1 %v2075_v8 }
  0x2c   : > { %2097 = vmatpush.bf16.msra.mxu2 %v2075_v8  ;;  %2098 = vmatpush.bf16.msra.mxu3 %v2075_v8 }
  0x2f   : > { %852 = vmatpush.bf16.msra.mxu0 %v2074_v9  ;;  %2099 = vmatpush.bf16.msra.mxu1 %v2074_v9 }
  0x30   : > { %2100 = vmatpush.bf16.msra.mxu2 %v2074_v9  ;;  %2101 = vmatpush.bf16.msra.mxu3 %v2074_v9 }
  0x32   : > { %1942 = vmatmul.msk.bf16.vlgmr.msra.gmra.mxu0 %vm648_vm1, %v2010_v10  ;;  %1958 = vmatmul.msk.bf16.vlgmr.msra.gmra.mxu1 %vm648_vm1, %v2026_v12  ;;  %v2036_v12 = vld [vmem:[%s2296_s22 + $0xd0] sm:$0xff] }
  0x33   : > { %1974 = vmatmul.msk.bf16.vlgmr.msra.gmra.mxu2 %vm648_vm1, %v2042_v20  ;;  %1990 = vmatmul.msk.bf16.vlgmr.msra.gmra.mxu3 %vm648_vm1, %v2058_v43  ;;  %v2049_v20 = vld [vmem:[%s2296_s22 + $0x138] sm:$0xff]  ;;  %v2024_v43 = vld [vmem:[%s2296_s22 + $0x70] sm:$0xff] }
  0x42   : > { %1943 = vmatmul.msk.bf16.gmra.mxu0 %vm648_vm1, %v2011_v11  ;;  %1959 = vmatmul.msk.bf16.gmra.mxu1 %vm648_vm1, %v2027_v14  ;;  %v2022_v14 = vld [vmem:[%s2296_s22 + $0x60] sm:$0xff] }
  0x43   : > { %1975 = vmatmul.msk.bf16.gmra.mxu2 %vm648_vm1, %v2043_v23  ;;  %1991 = vmatmul.msk.bf16.gmra.mxu3 %vm648_vm1, %v2059_v57 }
  0x52   : > { %1944 = vmatmul.msk.bf16.gmra.mxu0 %vm648_vm1, %v2012_v13  ;;  %1960 = vmatmul.msk.bf16.gmra.mxu1 %vm648_vm1, %v2028_v16 }
  0x53   : > { %1976 = vmatmul.msk.bf16.gmra.mxu2 %vm648_vm1, %v2044_v26  ;;  %1992 = vmatmul.msk.bf16.gmra.mxu3 %vm648_vm1, %v2060_v7  ;;  %v2037_v26 = vld [vmem:[%s2296_s22 + $0xd8] sm:$0xff]  ;;  %v2064_v7 = vld [vmem:[%s2296_s22 + $0x1b0] sm:$0xff] }
  0x62   : > { %1945 = vmatmul.msk.bf16.gmra.mxu0 %vm648_vm1, %v2013_v15  ;;  %1961 = vmatmul.msk.bf16.gmra.mxu1 %vm648_vm1, %v2029_v18 }
  0x63   : > { %1977 = vmatmul.msk.bf16.gmra.mxu2 %vm648_vm1, %v2045_v30 }
  0x72   : > { %1946 = vmatmul.msk.bf16.gmra.mxu0 %vm648_vm1, %v2014_v17  ;;  %1962 = vmatmul.msk.bf16.gmra.mxu1 %vm648_vm1, %v2030_v21  ;;  %v2061_v21 = vld [vmem:[%s2296_s22 + $0x198] sm:$0xff] }
  0x73   : > { %1978 = vmatmul.msk.bf16.gmra.mxu2 %vm648_vm1, %v2046_v42  ;;  %1993 = vmatmul.msk.bf16.gmra.mxu3 %vm648_vm1, %v2061_v21 }
  0x82   : > { %1947 = vmatmul.msk.bf16.gmra.mxu0 %vm648_vm1, %v2015_v19  ;;  %1963 = vmatmul.msk.bf16.gmra.mxu1 %vm648_vm1, %v2031_v24 }
  0x83   : > { %1979 = vmatmul.msk.bf16.gmra.mxu2 %vm648_vm1, %v2047_v56 }
  0x92   : > { %1948 = vmatmul.msk.bf16.gmra.mxu0 %vm648_vm1, %v2016_v22  ;;  %1964 = vmatmul.msk.bf16.gmra.mxu1 %vm648_vm1, %v2032_v27 }
  0x93   : > { %1980 = vmatmul.msk.bf16.gmra.mxu2 %vm648_vm1, %v2048_v6  ;;  %v2052_v6 = vld [vmem:[%s2296_s22 + $0x150] sm:$0xff] }
  0xa2   : > { %1949 = vmatmul.msk.bf16.gmra.mxu0 %vm648_vm1, %v2017_v25  ;;  %1965 = vmatmul.msk.bf16.gmra.mxu1 %vm648_vm1, %v2033_v35  ;;  %v2062_v35 = vld [vmem:[%s2296_s22 + $0x1a0] sm:$0xff] }
  0xa3   : > { %1981 = vmatmul.msk.bf16.gmra.mxu2 %vm648_vm1, %v2049_v20  ;;  %1994 = vmatmul.msk.bf16.gmra.mxu3 %vm648_vm1, %v2062_v35 }
  0xaf   : > { %v854_v29 = vpop.f32.mrf.mxu0  ;;  %v2346_v45 = vpop.f32.mrf.mxu1 }
  0xb0   : > { %v1307_v32 = vmul.f32 %v854_v29, %v854_v29 }
  0xb2   : > { %1950 = vmatmul.msk.bf16.gmra.mxu0 %vm648_vm1, %v2018_v28  ;;  %1966 = vmatmul.msk.bf16.gmra.mxu1 %vm648_vm1, %v2034_v48  ;;  %v2023_v28 = vld [vmem:[%s2296_s22 + $0x68] sm:$0xff] }
  0xb7   : > { %v856_v31 = vpop.f32.mrf.mxu0  ;;  %v2351_v52 = vpop.f32.mrf.mxu1 }
  0xb8   : > { %v1174_v33 = vadd.f32 %v856_v31, %v854_v29  ;;  %v1308_v34 = vmul.f32 %v856_v31, %v856_v31 }
  0xba   : > { %v1435_v36 = vadd.f32 %v1308_v34, %v1307_v32  ;;  %v2050_v34 = vld [vmem:[%s2296_s22 + $0x140] sm:$0xff] }
  0xbb   : > { %1982 = vmatmul.msk.bf16.gmra.mxu2 %vm648_vm1, %v2050_v34 }
  0xbf   : > { %v859_v38 = vpop.f32.mrf.mxu0  ;;  %v2358_v59 = vpop.f32.mrf.mxu1 }
  0xc0   : > { %v1175_v39 = vadd.f32 %v1174_v33, %v859_v38  ;;  %v1309_v40 = vmul.f32 %v859_v38, %v859_v38 }
  0xc2   : > { %v1436_v41 = vadd.f32 %v1435_v36, %v1309_v40  ;;  %1951 = vmatmul.msk.bf16.gmra.mxu0 %vm648_vm1, %v2019_v37  ;;  %1967 = vmatmul.msk.bf16.gmra.mxu1 %vm648_vm1, %v2035_v62  ;;  %v2396_v40 = vpop.f32.mrf.mxu2  ;;  %v2025_v62 = vld [vmem:[%s2296_s22 + $0x78] sm:$0xff] }
  0xc7   : > { %v861_v44 = vpop.f32.mrf.mxu0  ;;  %v2363_v2 = vpop.f32.mrf.mxu1 }
  0xc8   : > { %v1176_v46 = vadd.f32 %v1175_v39, %v861_v44  ;;  %v1310_v47 = vmul.f32 %v861_v44, %v861_v44 }
  0xca   : > { %v1437_v49 = vadd.f32 %v1436_v41, %v1310_v47  ;;  %v2038_v41 = vld [vmem:[%s2296_s22 + $0xe0] sm:$0xff] }
  0xcf   : > { %v864_v51 = vpop.f32.mrf.mxu0  ;;  %v2370_v9 = vpop.f32.mrf.mxu1 }
  0xd0   : > { %v1177_v53 = vadd.f32 %v1176_v46, %v864_v51  ;;  %v1311_v54 = vmul.f32 %v864_v51, %v864_v51  ;;  %v2051_v51 = vld [vmem:[%s2296_s22 + $0x148] sm:$0xff] }
  0xd1   : > { %1983 = vmatmul.msk.bf16.gmra.mxu2 %vm648_vm1, %v2051_v51  ;;  %v2456_v51 = vpop.f32.mrf.mxu3 }
  0xd2   : > { %v1438_v55 = vadd.f32 %v1437_v49, %v1311_v54  ;;  %1952 = vmatmul.msk.bf16.gmra.mxu0 %vm648_vm1, %v2020_v50  ;;  %1968 = vmatmul.msk.bf16.gmra.mxu1 %vm648_vm1, %v2036_v12  ;;  %v2403_v49 = vpop.f32.mrf.mxu2  ;;  %2889 = vst [vmem:[#allocation5_spill] sm:$0xff] %v2456_v51 }
  0xd7   : > { %v866_v58 = vpop.f32.mrf.mxu0  ;;  %v2375_v16 = vpop.f32.mrf.mxu1 }
  0xd8   : > { %v1178_v60 = vadd.f32 %v1177_v53, %v866_v58  ;;  %v1312_v61 = vmul.f32 %v866_v58, %v866_v58  ;;  %v2063_v53 = vld [vmem:[%s2296_s22 + $0x1a8] sm:$0xff] }
  0xd9   : > { %1995 = vmatmul.msk.bf16.gmra.mxu3 %vm648_vm1, %v2063_v53 }
  0xda   : > { %v1439_v63 = vadd.f32 %v1438_v55, %v1312_v61  ;;  %v2412_v58 = vpop.f32.mrf.mxu2 }
  0xdf   : > { %v869_v1 = vpop.f32.mrf.mxu0  ;;  %v2382_v23 = vpop.f32.mrf.mxu1 }
  0xe0   : > { %v1179_v3 = vadd.f32 %v1178_v60, %v869_v1  ;;  %v1313_v4 = vmul.f32 %v869_v1, %v869_v1  ;;  %v2039_v60 = vld [vmem:[%s2296_s22 + $0xe8] sm:$0xff] }
  0xe1   : > { %1984 = vmatmul.msk.bf16.gmra.mxu2 %vm648_vm1, %v2052_v6 }
  0xe2   : > { %v1440_v5 = vadd.f32 %v1439_v63, %v1313_v4  ;;  %1953 = vmatmul.msk.bf16.gmra.mxu0 %vm648_vm1, %v2021_v0  ;;  %1969 = vmatmul.msk.bf16.gmra.mxu1 %vm648_vm1, %v2037_v26  ;;  %v2419_v4 = vpop.f32.mrf.mxu2 }
  0xe7   : > { %v871_v8 = vpop.f32.mrf.mxu0  ;;  %v2387_v30 = vpop.f32.mrf.mxu1 }
  0xe8   : > { %v1180_v10 = vadd.f32 %v1179_v3, %v871_v8  ;;  %v1314_v11 = vmul.f32 %v871_v8, %v871_v8 }
  0xe9   : > { %1996 = vmatmul.msk.bf16.gmra.mxu3 %vm648_vm1, %v2064_v7 }
  0xea   : > { %v1441_v13 = vadd.f32 %v1440_v5, %v1314_v11 }
  0xef   : > { %v874_v15 = vpop.f32.mrf.mxu0  ;;  %v2394_v37 = vpop.f32.mrf.mxu1 }
  0xf0   : > { %v1181_v17 = vadd.f32 %v1180_v10, %v874_v15  ;;  %v1315_v18 = vmul.f32 %v874_v15, %v874_v15 }
  0xf2   : > { %v1442_v19 = vadd.f32 %v1441_v13, %v1315_v18  ;;  %1954 = vmatmul.msk.bf16.gmra.mxu0 %vm648_vm1, %v2022_v14  ;;  %1970 = vmatmul.msk.bf16.gmra.mxu1 %vm648_vm1, %v2038_v41  ;;  %v2428_v13 = vpop.f32.mrf.mxu2  ;;  %v2040_v14 = vld [vmem:[%s2296_s22 + $0xf0] sm:$0xff]  ;;  %v2054_v41 = vld [vmem:[%s2296_s22 + $0x160] sm:$0xff] }
  0xf7   : > { %v876_v22 = vpop.f32.mrf.mxu0  ;;  %v2401_v46 = vpop.f32.mrf.mxu1 }
  0xf8   : > { %v1182_v24 = vadd.f32 %v1181_v17, %v876_v22  ;;  %v1316_v25 = vmul.f32 %v876_v22, %v876_v22 }
  0xfa   : > { %v1443_v27 = vadd.f32 %v1442_v19, %v1316_v25  ;;  %v2432_v20 = vpop.f32.mrf.mxu2  ;;  %v2065_v25 = vld [vmem:[%s2296_s22 + $0x1b8] sm:$0xff] }
  0xfb   : > { %1997 = vmatmul.msk.bf16.gmra.mxu3 %vm648_vm1, %v2065_v25 }
  0xff   : > { %v879_v29 = vpop.f32.mrf.mxu0  ;;  %v2410_v55 = vpop.f32.mrf.mxu1 }
 0x100   : > { %v1183_v31 = vadd.f32 %v1182_v24, %v879_v29  ;;  %v1317_v32 = vmul.f32 %v879_v29, %v879_v29  ;;  %v2053_v24 = vld [vmem:[%s2296_s22 + $0x158] sm:$0xff] }
 0x101   : > { %1985 = vmatmul.msk.bf16.gmra.mxu2 %vm648_vm1, %v2053_v24 }
 0x102   : > { %v1444_v33 = vadd.f32 %v1443_v27, %v1317_v32  ;;  %1955 = vmatmul.msk.bf16.gmra.mxu0 %vm648_vm1, %v2023_v28  ;;  %1971 = vmatmul.msk.bf16.gmra.mxu1 %vm648_vm1, %v2039_v60  ;;  %v2440_v29 = vpop.f32.mrf.mxu2 }
 0x107   : > { %v881_v36 = vpop.f32.mrf.mxu0  ;;  %v2417_v0 = vpop.f32.mrf.mxu1 }
 0x108   : > { %v1184_v38 = vadd.f32 %v1183_v31, %v881_v36  ;;  %v1318_v39 = vmul.f32 %v881_v36, %v881_v36  ;;  %v2041_v31 = vld [vmem:[%s2296_s22 + $0xf8] sm:$0xff] }
 0x10a   : > { %v1445_v42 = vadd.f32 %v1444_v33, %v1318_v39 }
 0x10f   : > { %v884_v44 = vpop.f32.mrf.mxu0  ;;  %v2426_v10 = vpop.f32.mrf.mxu1 }
 0x110   : > { %v1185_v47 = vadd.f32 %v1184_v38, %v884_v44  ;;  %v1319_v48 = vmul.f32 %v884_v44, %v884_v44  ;;  %v2446_v38 = vpop.f32.mrf.mxu2 }
 0x111   : > { %1986 = vmatmul.msk.bf16.gmra.mxu2 %vm648_vm1, %v2054_v41 }
 0x112   : > { %v1446_v50 = vadd.f32 %v1445_v42, %v1319_v48  ;;  %1956 = vmatmul.msk.bf16.gmra.mxu0 %vm648_vm1, %v2024_v43  ;;  %1972 = vmatmul.msk.bf16.gmra.mxu1 %vm648_vm1, %v2040_v14  ;;  %v2066_v42 = vld [vmem:[%s2296_s22 + $0x1c0] sm:$0xff] }
 0x113   : > { %1998 = vmatmul.msk.bf16.gmra.mxu3 %vm648_vm1, %v2066_v42 }
 0x117   : > { %v886_v54 = vpop.f32.mrf.mxu0  ;;  %v2434_v21 = vpop.f32.mrf.mxu1 }
 0x118   : > { %v1186_v56 = vadd.f32 %v1185_v47, %v886_v54  ;;  %v1320_v57 = vmul.f32 %v886_v54, %v886_v54 }
 0x11a   : > { %v1447_v61 = vadd.f32 %v1446_v50, %v1320_v57  ;;  %v2454_v50 = vpop.f32.mrf.mxu2 }
 0x11f   : > { %v889_v63 = vpop.f32.mrf.mxu0  ;;  %v2444_v33 = vpop.f32.mrf.mxu1 }
 0x120   : > { %v1187_v1 = vadd.f32 %v1186_v56, %v889_v63  ;;  %v1321_v3 = vmul.f32 %v889_v63, %v889_v63 }
 0x122   : > { %v1448_v5 = vadd.f32 %v1447_v61, %v1321_v3  ;;  %1957 = vmatmul.msk.bf16.gmra.mxu0 %vm648_vm1, %v2025_v62  ;;  %1973 = vmatmul.msk.bf16.gmra.mxu1 %vm648_vm1, %v2041_v31  ;;  %v2460_v61 = vpop.f32.mrf.mxu2  ;;  %v2462_v62 = vpop.f32.mrf.mxu3  ;;  %v2067_v3 = vld [vmem:[%s2296_s22 + $0x1c8] sm:$0xff]  ;;  %v2057_v31 = vld [vmem:[%s2296_s22 + $0x178] sm:$0xff] }
 0x123   : > { %2890 = vst [vmem:[#allocation6_spill] sm:$0xff] %v2462_v62  ;;  %1999 = vmatmul.msk.bf16.gmra.mxu3 %vm648_vm1, %v2067_v3 }
 0x127   : > { %v891_v8 = vpop.f32.mrf.mxu0  ;;  %v2452_v43 = vpop.f32.mrf.mxu1 }
 0x128   : > { %v1188_v11 = vadd.f32 %v1187_v1, %v891_v8  ;;  %v1322_v12 = vmul.f32 %v891_v8, %v891_v8  ;;  %v2055_v1 = vld [vmem:[%s2296_s22 + $0x168] sm:$0xff] }
 0x129   : > { %1987 = vmatmul.msk.bf16.gmra.mxu2 %vm648_vm1, %v2055_v1 }
 0x12a   : > { %v1449_v15 = vadd.f32 %v1448_v5, %v1322_v12  ;;  %v2468_v6 = vpop.f32.mrf.mxu2  ;;  %v2470_v7 = vpop.f32.mrf.mxu3 }
 0x12b   : > { %2891 = vst [vmem:[#allocation7_spill] sm:$0xff] %v2470_v7 }
 0x12f   : > { %v894_v17 = vpop.f32.mrf.mxu0  ;;  %v2458_v56 = vpop.f32.mrf.mxu1 }
 0x130   : > { %v1189_v18 = vadd.f32 %v1188_v11, %v894_v17  ;;  %v1323_v19 = vmul.f32 %v894_v17, %v894_v17  ;;  %v2068_v17 = vld [vmem:[%s2296_s22 + $0x1d0] sm:$0xff] }
 0x132   : > { %v1450_v22 = vadd.f32 %v1449_v15, %v1323_v19  ;;  %v2474_v12 = vpop.f32.mrf.mxu2  ;;  %v2476_v14 = vpop.f32.mrf.mxu3  ;;  %v2056_v15 = vld [vmem:[%s2296_s22 + $0x170] sm:$0xff] }
 0x133   : > { %2892 = vst [vmem:[#allocation8_spill] sm:$0xff] %v2476_v14  ;;  %2000 = vmatmul.msk.bf16.gmra.mxu3 %vm648_vm1, %v2068_v17 }
 0x137   : > { %v896_v26 = vpop.f32.mrf.mxu0  ;;  %v2472_v8 = vpop.f32.mrf.mxu1 }
 0x138   : > { %v1190_v27 = vadd.f32 %v1189_v18, %v896_v26  ;;  %v1324_v28 = vmul.f32 %v896_v26, %v896_v26 }
 0x139   : > { %1988 = vmatmul.msk.bf16.gmra.mxu2 %vm648_vm1, %v2056_v15 }
 0x13a   : > { %v1451_v32 = vadd.f32 %v1450_v22, %v1324_v28  ;;  %v2484_v22 = vpop.f32.mrf.mxu2  ;;  %v2486_v24 = vpop.f32.mrf.mxu3 }
 0x13b   : > { %2893 = vst [vmem:[#allocation9_spill] sm:$0xff] %v2484_v22 }
 0x13c   : > { %2894 = vst [vmem:[#allocation10_spill] sm:$0xff] %v2486_v24 }
 0x13f   : > { %v899_v34 = vpop.f32.mrf.mxu0  ;;  %v2480_v18 = vpop.f32.mrf.mxu1 }
 0x140   : > { %v1191_v35 = vadd.f32 %v1190_v27, %v899_v34  ;;  %v1325_v36 = vmul.f32 %v899_v34, %v899_v34 }
 0x142   : > { %v1452_v39 = vadd.f32 %v1451_v32, %v1325_v36  ;;  %v2490_v27 = vpop.f32.mrf.mxu3  ;;  %v2492_v28 = vpop.f32.mrf.mxu2  ;;  %v2069_v32 = vld [vmem:[%s2296_s22 + $0x1d8] sm:$0xff] }
 0x143   : > { %2895 = vst [vmem:[#allocation11_spill] sm:$0xff] %v2490_v27  ;;  %2001 = vmatmul.msk.bf16.gmra.mxu3 %vm648_vm1, %v2069_v32 }
 0x144   : > { %2896 = vst [vmem:[#allocation12_spill] sm:$0xff] %v2492_v28 }
 0x147   : > { %v901_v44 = vpop.f32.mrf.mxu0  ;;  %v2488_v25 = vpop.f32.mrf.mxu1 }
 0x148   : > { %v1192_v47 = vadd.f32 %v1191_v35, %v901_v44  ;;  %v1326_v48 = vmul.f32 %v901_v44, %v901_v44 }
 0x149   : > { %1989 = vmatmul.msk.bf16.gmra.mxu2 %vm648_vm1, %v2057_v31  ;;  %v2071_v31 = vld [vmem:[%s2296_s22 + $0x1e8] sm:$0xff] }
 0x14a   : > { %v1453_v53 = vadd.f32 %v1452_v39, %v1326_v48  ;;  %v2500_v36 = vpop.f32.mrf.mxu3  ;;  %v2502_v39 = vpop.f32.mrf.mxu2 }
 0x14b   : > { %2897 = vst [vmem:[#allocation13_spill] sm:$0xff] %v2500_v36 }
 0x14c   : > { %2898 = vst [vmem:[#allocation14_spill] sm:$0xff] %v2502_v39 }
 0x14f   : > { %v904_v54 = vpop.f32.mrf.mxu0  ;;  %v2498_v35 = vpop.f32.mrf.mxu1 }
 0x150   : > { %v1193_v57 = vadd.f32 %v1192_v47, %v904_v54  ;;  %v1327_v60 = vmul.f32 %v904_v54, %v904_v54  ;;  %v2070_v47 = vld [vmem:[%s2296_s22 + $0x1e0] sm:$0xff] }
 0x152   : > { %v1454_v63 = vadd.f32 %v1453_v53, %v1327_v60  ;;  %v2504_v42 = vpop.f32.mrf.mxu3  ;;  %v2510_v48 = vpop.f32.mrf.mxu2 }
 0x153   : > { %2899 = vst [vmem:[#allocation15_spill] sm:$0xff] %v2504_v42  ;;  %2002 = vmatmul.msk.bf16.gmra.mxu3 %vm648_vm1, %v2070_v47 }
 0x154   : > { %2900 = vst [vmem:[#allocation16_spill] sm:$0xff] %v2510_v48 }
 0x157   : > { %v906_v5 = vpop.f32.mrf.mxu0  ;;  %v2506_v44 = vpop.f32.mrf.mxu1 }
 0x158   : > { %v1328_v17 = vmul.f32 %v906_v5, %v906_v5  ;;  %v1194_v32 = vadd.f32 %v1193_v57, %v906_v5 }
 0x15a   : > { %v2512_v54 = vpop.f32.mrf.mxu3  ;;  %v2516_v3 = vpop.f32.mrf.mxu2  ;;  %v1455_v47 = vadd.f32 %v1454_v63, %v1328_v17 }
 0x15b   : > { %2901 = vst [vmem:[#allocation17_spill] sm:$0xff] %v2512_v54 }
 0x15c   : > { %2902 = vst [vmem:[#allocation18_spill] sm:$0xff] %v2516_v3 }
 0x15f   : > { %v909_v11 = vpop.f32.mrf.mxu0  ;;  %v2514_v60 = vpop.f32.mrf.mxu1 }
 0x160   : > { %v1329_v42 = vmul.f32 %v909_v11, %v909_v11  ;;  %v1195_v27 = vadd.f32 %v1194_v32, %v909_v11 }
 0x162   : > { %v2518_v15 = vpop.f32.mrf.mxu3  ;;  %v1456_v54 = vadd.f32 %v1455_v47, %v1329_v42  ;;  %v2526_v3 = vpop.f32.mrf.mxu2 }
 0x163   : > { %2903 = vst [vmem:[#allocation19_spill] sm:$0xff] %v2518_v15  ;;  %2003 = vmatmul.msk.bf16.gmra.mxu3 %vm648_vm1, %v2071_v31 }
 0x167   : > { %v911_v19 = vpop.f32.mrf.mxu0  ;;  %v2522_v36 = vpop.f32.mrf.mxu1 }
 0x168   : > { %v1330_v24 = vmul.f32 %v911_v19, %v911_v19  ;;  %v1196_v7 = vadd.f32 %v1195_v27, %v911_v19 }
 0x16a   : > { %v2524_v51 = vpop.f32.mrf.mxu3  ;;  %v1457_v15 = vadd.f32 %v1456_v54, %v1330_v24 }
 0x16b   : > { %2904 = vst [vmem:[#allocation20_spill] sm:$0xff] %v2524_v51 }
 0x16f   : > { %v914_v26 = vpop.f32.mrf.mxu0  ;;  %v2528_v17 = vpop.f32.mrf.mxu1 }
 0x170   : > { %v1331_v62 = vmul.f32 %v914_v26, %v914_v26  ;;  %v1197_v48 = vadd.f32 %v1196_v7, %v914_v26  ;;  %v2072_v7 = vld [vmem:[%s2296_s22 + $0x1f0] sm:$0xff]  ;;  %v2533_v26 = vpop.f32.mrf.mxu2 }
 0x172   : > { %v1458_v57 = vadd.f32 %v1457_v15, %v1331_v62  ;;  %v2530_v32 = vpop.f32.mrf.mxu3 }
 0x173   : > { %2004 = vmatmul.msk.bf16.gmra.mxu3 %vm648_vm1, %v2072_v7 }
 0x177   : > { %v916_v34 = vpop.f32.mrf.mxu0 }
 0x178   : > { %v1332_v39 = vmul.f32 %v916_v34, %v916_v34  ;;  %v1198_v5 = vadd.f32 %v1197_v48, %v916_v34 }
 0x17a   : > { %v1459_v28 = vadd.f32 %v1458_v57, %v1332_v39  ;;  %v2538_v57 = vpop.f32.mrf.mxu1 }
 0x17f   : > { %v919_v41 = vpop.f32.mrf.mxu0 }
 0x180   : > { %v1333_v31 = vmul.f32 %v919_v41, %v919_v41  ;;  %v1199_v22 = vadd.f32 %v1198_v5, %v919_v41 }
 0x182   : > { %v1460_v42 = vadd.f32 %v1459_v28, %v1333_v31 }
 0x187   : > { %v921_v53 = vpop.f32.mrf.mxu0 }
 0x188   : > { %v1334_v63 = vmul.f32 %v921_v53, %v921_v53  ;;  %v1200_v19 = vadd.f32 %v1199_v22, %v921_v53  ;;  %v2536_v53 = vpop.f32.mrf.mxu3 }
 0x18a   : > { %v1461_v47 = vadd.f32 %v1460_v42, %v1334_v63  ;;  %v1341_v42 = vmul.f32 %v2358_v59, %v2358_v59 }
 0x18f   : > { %v924_v1 = vpop.f32.mrf.mxu0 }
 0x190   : > { %v1335_v27 = vmul.f32 %v924_v1, %v924_v1  ;;  %v1201_v51 = vadd.f32 %v1200_v19, %v924_v1  ;;  %v1339_v1 = vmul.f32 %v2346_v45, %v2346_v45  ;;  %v2554_v7 = vpop.f32.mrf.mxu3 }
 0x192   : > { %v1462_v62 = vadd.f32 %v1461_v47, %v1335_v27  ;;  %v1342_v47 = vmul.f32 %v2363_v2, %v2363_v2 }
 0x197   : > { %v926_v14 = vpop.f32.mrf.mxu0 }
 0x198   : > { %v1336_v24 = vmul.f32 %v926_v14, %v926_v14  ;;  %v1202_v34 = vadd.f32 %v1201_v51, %v926_v14  ;;  %v1340_v14 = vmul.f32 %v2351_v52, %v2351_v52 }
 0x19a   : > { %v1463_v39 = vadd.f32 %v1462_v62, %v1336_v24 }
 0x19f   : > { %v929_v11 = vpop.f32.mrf.mxu0 }
 0x1a0   : > { %v1337_v48 = vmul.f32 %v929_v11, %v929_v11  ;;  %v1203_v41 = vadd.f32 %v1202_v34, %v929_v11  ;;  %v2546_v11 = vpop.f32.mrf.mxu2 }
 0x1a2   : > { %v1464_v15 = vadd.f32 %v1463_v39, %v1337_v48  ;;  %v2073_v48 = vld [vmem:[%s2296_s22 + $0x1f8] sm:$0xff]  ;;  %v2560_v39 = vpop.f32.mrf.mxu1 }
 0x1a3   : > { %2005 = vmatmul.msk.bf16.gmra.mxu3 %vm648_vm1, %v2073_v48  ;;  %v1352_v48 = vmul.f32 %v2434_v21, %v2434_v21 }
 0x1a7   : > { %v931_v54 = vpop.f32.mrf.mxu0 }
 0x1a8   : > { %v1204_v28 = vadd.f32 %v1203_v41, %v931_v54  ;;  %v1338_v22 = vmul.f32 %v931_v54, %v931_v54 }
 0x1aa   : > { %v1205_v5 = vadd.f32 %v1204_v28, %v2346_v45  ;;  %v1465_v51 = vadd.f32 %v1464_v15, %v1338_v22  ;;  %v2569_v22 = vpop.f32.mrf.mxu2 }
 0x1ac   : > { %v1206_v31 = vadd.f32 %v1205_v5, %v2351_v52  ;;  %v1466_v63 = vadd.f32 %v1465_v51, %v1339_v1  ;;  %v1343_v52 = vmul.f32 %v2370_v9, %v2370_v9 }
 0x1ae   : > { %v1207_v19 = vadd.f32 %v1206_v31, %v2358_v59  ;;  %v1467_v27 = vadd.f32 %v1466_v63, %v1340_v14  ;;  %v1344_v59 = vmul.f32 %v2375_v16, %v2375_v16  ;;  %v2577_v31 = vpop.f32.mrf.mxu3 }
 0x1b0   : > { %v1208_v45 = vadd.f32 %v1207_v19, %v2363_v2  ;;  %v1468_v24 = vadd.f32 %v1467_v27, %v1341_v42  ;;  %v1345_v2 = vmul.f32 %v2382_v23, %v2382_v23  ;;  %v2582_v19 = vpop.f32.mrf.mxu1 }
 0x1b2   : > { %v1209_v62 = vadd.f32 %v1208_v45, %v2370_v9  ;;  %v1469_v34 = vadd.f32 %v1468_v24, %v1342_v47  ;;  %v1346_v9 = vmul.f32 %v2387_v30, %v2387_v30 }
 0x1b4   : > { %v1210_v41 = vadd.f32 %v1209_v62, %v2375_v16  ;;  %v1470_v54 = vadd.f32 %v1469_v34, %v1343_v52  ;;  %v1347_v16 = vmul.f32 %v2394_v37, %v2394_v37  ;;  %v2590_v52 = vpop.f32.mrf.mxu2 }
 0x1b6   : > { %v1211_v15 = vadd.f32 %v1210_v41, %v2382_v23  ;;  %v1471_v28 = vadd.f32 %v1470_v54, %v1344_v59  ;;  %v1348_v23 = vmul.f32 %v2401_v46, %v2401_v46  ;;  %v2598_v41 = vpop.f32.mrf.mxu3 }
 0x1b8   : > { %v1212_v1 = vadd.f32 %v1211_v15, %v2387_v30  ;;  %v1472_v5 = vadd.f32 %v1471_v28, %v1345_v2  ;;  %v1349_v30 = vmul.f32 %v2410_v55, %v2410_v55  ;;  %v1004_v15 = vpop.f32.mrf.mxu1  ;;  %v1354_v28 = vmul.f32 %v2452_v43, %v2452_v43 }
 0x1ba   : > { %v1213_v51 = vadd.f32 %v1212_v1, %v2394_v37  ;;  %v1473_v14 = vadd.f32 %v1472_v5, %v1346_v9  ;;  %v1350_v37 = vmul.f32 %v2417_v0, %v2417_v0  ;;  %v1355_v1 = vmul.f32 %v2458_v56, %v2458_v56 }
 0x1bc   : > { %v1214_v63 = vadd.f32 %v1213_v51, %v2401_v46  ;;  %v1474_v42 = vadd.f32 %v1473_v14, %v1347_v16  ;;  %v1351_v46 = vmul.f32 %v2426_v10, %v2426_v10  ;;  %v2609_v16 = vpop.f32.mrf.mxu2  ;;  %v1356_v51 = vmul.f32 %v2472_v8, %v2472_v8 }
 0x1be   : > { %v1215_v27 = vadd.f32 %v1214_v63, %v2410_v55  ;;  %v1475_v47 = vadd.f32 %v1474_v42, %v1348_v23  ;;  %v1357_v23 = vmul.f32 %v2480_v18, %v2480_v18  ;;  %v2617_v42 = vpop.f32.mrf.mxu3 }
 0x1c0   : > { %v1216_v45 = vadd.f32 %v1215_v27, %v2417_v0  ;;  %v1476_v24 = vadd.f32 %v1475_v47, %v1349_v30  ;;  %v1353_v0 = vmul.f32 %v2444_v33, %v2444_v33  ;;  %v1006_v47 = vpop.f32.mrf.mxu1 }
 0x1c2   : > { %v1477_v62 = vadd.f32 %v1476_v24, %v1350_v37  ;;  %v1217_v34 = vadd.f32 %v1216_v45, %v2426_v10  ;;  %v1359_v37 = vmul.f32 %v2498_v35, %v2498_v35  ;;  %v1360_v24 = vmul.f32 %v2506_v44, %v2506_v44 }
 0x1c4   : > { %v1218_v55 = vadd.f32 %v1217_v34, %v2434_v21  ;;  %v1478_v59 = vadd.f32 %v1477_v62, %v1351_v46  ;;  %v2628_v62 = vpop.f32.mrf.mxu2  ;;  %v1361_v34 = vmul.f32 %v2514_v60, %v2514_v60 }
 0x1c6   : > { %v1219_v54 = vadd.f32 %v1218_v55, %v2444_v33  ;;  %v1479_v2 = vadd.f32 %v1478_v59, %v1352_v48  ;;  %v1362_v55 = vmul.f32 %v2522_v36, %v2522_v36 }
 0x1c8   : > { %v1220_v10 = vadd.f32 %v1219_v54, %v2452_v43  ;;  %v1480_v9 = vadd.f32 %v1479_v2, %v1353_v0  ;;  %v2636_v0 = vpop.f32.mrf.mxu3 }
 0x1ca   : > { %v1221_v21 = vadd.f32 %v1220_v10, %v2458_v56  ;;  %v1481_v5 = vadd.f32 %v1480_v9, %v1354_v28  ;;  %v1358_v56 = vmul.f32 %v2488_v25, %v2488_v25  ;;  %v1009_v28 = vpop.f32.mrf.mxu1 }
 0x1cc   : > { %v1222_v33 = vadd.f32 %v1221_v21, %v2472_v8  ;;  %v1482_v14 = vadd.f32 %v1481_v5, %v1355_v1  ;;  %v2647_v5 = vpop.f32.mrf.mxu2 }
 0x1ce   : > { %v1223_v43 = vadd.f32 %v1222_v33, %v2480_v18  ;;  %v1483_v63 = vadd.f32 %v1482_v14, %v1356_v51 }
 0x1d0   : > { %v1224_v30 = vadd.f32 %v1223_v43, %v2488_v25  ;;  %v1484_v27 = vadd.f32 %v1483_v63, %v1357_v23  ;;  %v1367_v43 = vmul.f32 %v1004_v15, %v1004_v15  ;;  %v2652_v63 = vpop.f32.mrf.mxu3 }
 0x1d2   : > { %v1225_v8 = vadd.f32 %v1224_v30, %v2498_v35  ;;  %v1485_v45 = vadd.f32 %v1484_v27, %v1358_v56  ;;  %v1368_v30 = vmul.f32 %v1006_v47, %v1006_v47  ;;  %v1011_v27 = vpop.f32.mrf.mxu1 }
 0x1d4   : > { %v1226_v18 = vadd.f32 %v1225_v8, %v2506_v44  ;;  %v1486_v46 = vadd.f32 %v1485_v45, %v1359_v37  ;;  %v1363_v44 = vmul.f32 %v2528_v17, %v2528_v17 }
 0x1d6   : > { %v1227_v25 = vadd.f32 %v1226_v18, %v2514_v60  ;;  %v1487_v48 = vadd.f32 %v1486_v46, %v1360_v24  ;;  %v1364_v60 = vmul.f32 %v2538_v57, %v2538_v57  ;;  %v1370_v18 = vmul.f32 %v1011_v27, %v1011_v27  ;;  %v2654_v46 = vpop.f32.mrf.mxu2 }
 0x1d8   : > { %v1228_v35 = vadd.f32 %v1227_v25, %v2522_v36  ;;  %v1488_v59 = vadd.f32 %v1487_v48, %v1361_v34  ;;  %v1365_v36 = vmul.f32 %v2560_v39, %v2560_v39  ;;  %v1372_v25 = vmul.f32 %v2403_v49, %v2403_v49 }
 0x1da   : > { %v1229_v54 = vadd.f32 %v1228_v35, %v2528_v17  ;;  %v1489_v2 = vadd.f32 %v1488_v59, %v1362_v55  ;;  %v1366_v17 = vmul.f32 %v2582_v19, %v2582_v19  ;;  %v2662_v55 = vpop.f32.mrf.mxu3  ;;  %v1373_v35 = vmul.f32 %v2412_v58, %v2412_v58 }
 0x1dc   : > { %v1490_v10 = vadd.f32 %v1489_v2, %v1363_v44  ;;  %v1230_v9 = vadd.f32 %v1229_v54, %v2538_v57  ;;  %v1374_v44 = vmul.f32 %v2419_v4, %v2419_v4 }
 0x1de   : > { %v1491_v1 = vadd.f32 %v1490_v10, %v1364_v60  ;;  %v1231_v21 = vadd.f32 %v1230_v9, %v2560_v39  ;;  %v1369_v39 = vmul.f32 %v1009_v28, %v1009_v28  ;;  %v2673_v9 = vpop.f32.mrf.mxu2  ;;  %v1376_v60 = vmul.f32 %v2432_v20, %v2432_v20 }
 0x1e0   : > { %v1492_v51 = vadd.f32 %v1491_v1, %v1365_v36  ;;  %v1232_v33 = vadd.f32 %v1231_v21, %v2582_v19  ;;  %v1371_v19 = vmul.f32 %v2396_v40, %v2396_v40  ;;  %v1377_v21 = vmul.f32 %v2440_v29, %v2440_v29 }
 0x1e2   : > { %v1493_v14 = vadd.f32 %v1492_v51, %v1366_v17  ;;  %v1233_v23 = vadd.f32 %v1232_v33, %v1004_v15  ;;  %v2681_v51 = vpop.f32.mrf.mxu3 }
 0x1e4   : > { %v1494_v57 = vadd.f32 %v1493_v14, %v1367_v43  ;;  %v1234_v56 = vadd.f32 %v1233_v23, %v1006_v47  ;;  %v1379_v14 = vmul.f32 %v2454_v50, %v2454_v50  ;;  %v1380_v43 = vmul.f32 %v2460_v61, %v2460_v61 }
 0x1e6   : > { %v1495_v37 = vadd.f32 %v1494_v57, %v1368_v30  ;;  %v1235_v8 = vadd.f32 %v1234_v56, %v1009_v28  ;;  %v1375_v28 = vmul.f32 %v2428_v13, %v2428_v13  ;;  %v1081_v56 = vpop.f32.mrf.mxu2  ;;  %v1381_v30 = vmul.f32 %v2468_v6, %v2468_v6 }
 0x1e8   : > { %v1496_v45 = vadd.f32 %v1495_v37, %v1369_v39  ;;  %v1236_v24 = vadd.f32 %v1235_v8, %v1011_v27  ;;  %v1382_v37 = vmul.f32 %v2474_v12, %v2474_v12 }
 0x1ea   : > { %v1237_v34 = vadd.f32 %v1236_v24, %v2396_v40  ;;  %v1497_v15 = vadd.f32 %v1496_v45, %v1370_v18  ;;  %v2698_v39 = vpop.f32.mrf.mxu3  ;;  %v2905_v45 = vld [vmem:[#allocation9_spill] sm:$0xff] }
 0x1eb   : > { %v1383_v24 = vmul.f32 %v2905_v45, %v2905_v45 }
 0x1ec   : > { %v1238_v47 = vadd.f32 %v1237_v34, %v2403_v49  ;;  %v1498_v48 = vadd.f32 %v1497_v15, %v1371_v19  ;;  %v2906_v19 = vld [vmem:[#allocation12_spill] sm:$0xff] }
 0x1ed   : > { %v1384_v34 = vmul.f32 %v2906_v19, %v2906_v19 }
 0x1ee   : > { %v1239_v59 = vadd.f32 %v1238_v47, %v2412_v58  ;;  %v1499_v54 = vadd.f32 %v1498_v48, %v1372_v25  ;;  %v2907_v25 = vld [vmem:[#allocation14_spill] sm:$0xff] }
 0x1ef   : > { %v1385_v47 = vmul.f32 %v2907_v25, %v2907_v25 }
 0x1f0   : > { %v1240_v40 = vadd.f32 %v1239_v59, %v2419_v4  ;;  %v1500_v2 = vadd.f32 %v1499_v54, %v1373_v35  ;;  %v1084_v35 = vpop.f32.mrf.mxu2  ;;  %v2908_v59 = vld [vmem:[#allocation16_spill] sm:$0xff] }
 0x1f1   : > { %v1386_v54 = vmul.f32 %v2908_v59, %v2908_v59 }
 0x1f2   : > { %v1241_v49 = vadd.f32 %v1240_v40, %v2428_v13  ;;  %v1501_v10 = vadd.f32 %v1500_v2, %v1374_v44  ;;  %v1378_v13 = vmul.f32 %v2446_v38, %v2446_v38  ;;  %v2909_v2 = vld [vmem:[#allocation18_spill] sm:$0xff] }
 0x1f4   : > { %v1242_v58 = vadd.f32 %v1241_v49, %v2432_v20  ;;  %v1502_v1 = vadd.f32 %v1501_v10, %v1375_v28  ;;  %v1387_v28 = vmul.f32 %v2909_v2, %v2909_v2 }
 0x1f6   : > { %v1243_v4 = vadd.f32 %v1242_v58, %v2440_v29  ;;  %v1503_v36 = vadd.f32 %v1502_v1, %v1376_v60  ;;  %v2715_v60 = vpop.f32.mrf.mxu3  ;;  %v1388_v58 = vmul.f32 %v2526_v3, %v2526_v3 }
 0x1f8   : > { %v1244_v33 = vadd.f32 %v1243_v4, %v2446_v38  ;;  %v1504_v17 = vadd.f32 %v1503_v36, %v1377_v21  ;;  %v1389_v4 = vmul.f32 %v2533_v26, %v2533_v26 }
 0x1fa   : > { %v1245_v20 = vadd.f32 %v1244_v33, %v2454_v50  ;;  %v1505_v23 = vadd.f32 %v1504_v17, %v1378_v13  ;;  %v1390_v33 = vmul.f32 %v2546_v11, %v2546_v11 }
 0x1fc   : > { %v1246_v29 = vadd.f32 %v1245_v20, %v2460_v61  ;;  %v1506_v57 = vadd.f32 %v1505_v23, %v1379_v14  ;;  %v1086_v20 = vpop.f32.mrf.mxu2  ;;  %v1391_v23 = vmul.f32 %v2569_v22, %v2569_v22 }
 0x1fe   : > { %v1247_v27 = vadd.f32 %v1246_v29, %v2468_v6  ;;  %v1507_v38 = vadd.f32 %v1506_v57, %v1380_v43  ;;  %v1392_v29 = vmul.f32 %v2590_v52, %v2590_v52 }
 0x200   : > { %v1248_v8 = vadd.f32 %v1247_v27, %v2474_v12  ;;  %v1508_v50 = vadd.f32 %v1507_v38, %v1381_v30  ;;  %v2732_v30 = vpop.f32.mrf.mxu3  ;;  %v1393_v27 = vmul.f32 %v2609_v16, %v2609_v16 }
 0x202   : > { %v1509_v61 = vadd.f32 %v1508_v50, %v1382_v37  ;;  %v1249_v18 = vadd.f32 %v1248_v8, %v2905_v45 }
 0x204   : > { %v1250_v6 = vadd.f32 %v1249_v18, %v2906_v19  ;;  %v1510_v15 = vadd.f32 %v1509_v61, %v1383_v24  ;;  %v1089_v24 = vpop.f32.mrf.mxu2 }
 0x206   : > { %v1251_v12 = vadd.f32 %v1250_v6, %v2907_v25  ;;  %v1511_v48 = vadd.f32 %v1510_v15, %v1384_v34 }
 0x208   : > { %v1252_v44 = vadd.f32 %v1251_v12, %v2908_v59  ;;  %v1512_v40 = vadd.f32 %v1511_v48, %v1385_v47  ;;  %v2749_v6 = vpop.f32.mrf.mxu3  ;;  %v1398_v47 = vmul.f32 %v1081_v56, %v1081_v56  ;;  %v1399_v48 = vmul.f32 %v1084_v35, %v1084_v35 }
 0x20a   : > { %v1253_v49 = vadd.f32 %v1252_v44, %v2909_v2  ;;  %v1513_v10 = vadd.f32 %v1512_v40, %v1386_v54  ;;  %v1400_v44 = vmul.f32 %v1086_v20, %v1086_v20 }
 0x20c   : > { %v1254_v1 = vadd.f32 %v1253_v49, %v2526_v3  ;;  %v1514_v21 = vadd.f32 %v1513_v10, %v1387_v28  ;;  %v1091_v40 = vpop.f32.mrf.mxu2  ;;  %v1401_v28 = vmul.f32 %v1089_v24, %v1089_v24 }
 0x20e   : > { %v1255_v36 = vadd.f32 %v1254_v1, %v2533_v26  ;;  %v1515_v13 = vadd.f32 %v1514_v21, %v1388_v58  ;;  %v1402_v58 = vmul.f32 %v1091_v40, %v1091_v40 }
 0x210   : > { %v1256_v17 = vadd.f32 %v1255_v36, %v2546_v11  ;;  %v1516_v14 = vadd.f32 %v1515_v13, %v1389_v4  ;;  %v2751_v1 = vpop.f32.mrf.mxu3  ;;  %v2911_v36 = vld [vmem:[#allocation6_spill] sm:$0xff] }
 0x212   : > { %v1257_v43 = vadd.f32 %v1256_v17, %v2569_v22  ;;  %v1517_v3 = vadd.f32 %v1516_v14, %v1390_v33  ;;  %v1394_v22 = vmul.f32 %v2628_v62, %v2628_v62  ;;  %v2912_v17 = vld [vmem:[#allocation7_spill] sm:$0xff] }
 0x213   : > { %v1405_v14 = vmul.f32 %v2912_v17, %v2912_v17 }
 0x214   : > { %v1258_v57 = vadd.f32 %v1257_v43, %v2590_v52  ;;  %v1518_v26 = vadd.f32 %v1517_v3, %v1391_v23  ;;  %v1395_v52 = vmul.f32 %v2647_v5, %v2647_v5  ;;  %v2913_v43 = vld [vmem:[#allocation8_spill] sm:$0xff] }
 0x215   : > { %v1406_v3 = vmul.f32 %v2913_v43, %v2913_v43 }
 0x216   : > { %v1259_v11 = vadd.f32 %v1258_v57, %v2609_v16  ;;  %v1519_v38 = vadd.f32 %v1518_v26, %v1392_v29  ;;  %v1396_v16 = vmul.f32 %v2654_v46, %v2654_v46  ;;  %v2914_v26 = vld [vmem:[#allocation10_spill] sm:$0xff] }
 0x218   : > { %v1260_v37 = vadd.f32 %v1259_v11, %v2628_v62  ;;  %v1520_v8 = vadd.f32 %v1519_v38, %v1393_v27  ;;  %v1397_v62 = vmul.f32 %v2673_v9, %v2673_v9  ;;  %v1407_v27 = vmul.f32 %v2914_v26, %v2914_v26 }
 0x21a   : > { %v1521_v50 = vadd.f32 %v1520_v8, %v1394_v22  ;;  %v1261_v45 = vadd.f32 %v1260_v37, %v2647_v5  ;;  %v2768_v37 = vpop.f32.mrf.mxu3  ;;  %v2915_v22 = vld [vmem:[#allocation11_spill] sm:$0xff] }
 0x21b   : > { %v1408_v8 = vmul.f32 %v2915_v22, %v2915_v22 }
 0x21c   : > { %v1522_v61 = vadd.f32 %v1521_v50, %v1395_v52  ;;  %v1262_v18 = vadd.f32 %v1261_v45, %v2654_v46  ;;  %v2916_v52 = vld [vmem:[#allocation13_spill] sm:$0xff] }
 0x21e   : > { %v1523_v19 = vadd.f32 %v1522_v61, %v1396_v16  ;;  %v1263_v34 = vadd.f32 %v1262_v18, %v2673_v9  ;;  %v2910_v9 = vld [vmem:[#allocation5_spill] sm:$0xff]  ;;  %v2917_v16 = vld [vmem:[#allocation15_spill] sm:$0xff] }
 0x21f   : > { %v1403_v21 = vmul.f32 %v2910_v9, %v2910_v9 }
 0x220   : > { %v1524_v15 = vadd.f32 %v1523_v19, %v1397_v62  ;;  %v1264_v25 = vadd.f32 %v1263_v34, %v1081_v56  ;;  %v1410_v19 = vmul.f32 %v2917_v16, %v2917_v16 }
 0x222   : > { %v1525_v12 = vadd.f32 %v1524_v15, %v1398_v47  ;;  %v1265_v5 = vadd.f32 %v1264_v25, %v1084_v35  ;;  %v1404_v35 = vmul.f32 %v2911_v36, %v2911_v36  ;;  %v2918_v15 = vld [vmem:[#allocation17_spill] sm:$0xff] }
 0x223   : > { %v1411_v25 = vmul.f32 %v2918_v15, %v2918_v15 }
 0x224   : > { %v1526_v59 = vadd.f32 %v1525_v12, %v1399_v48  ;;  %v1266_v54 = vadd.f32 %v1265_v5, %v1086_v20  ;;  %v2919_v5 = vld [vmem:[#allocation19_spill] sm:$0xff] }
 0x225   : > { %v1412_v48 = vmul.f32 %v2919_v5, %v2919_v5 }
 0x226   : > { %v1527_v2 = vadd.f32 %v1526_v59, %v1400_v44  ;;  %v1267_v46 = vadd.f32 %v1266_v54, %v1089_v24  ;;  %v1409_v24 = vmul.f32 %v2916_v52, %v2916_v52  ;;  %v1161_v44 = vpop.f32.mrf.mxu3 }
 0x228   : > { %v1528_v49 = vadd.f32 %v1527_v2, %v1401_v28  ;;  %v1268_v10 = vadd.f32 %v1267_v46, %v1091_v40  ;;  %v2920_v40 = vld [vmem:[#allocation20_spill] sm:$0xff] }
 0x229   : > { %v1413_v2 = vmul.f32 %v2920_v40, %v2920_v40 }
 0x22a   : > { %v1269_v56 = vadd.f32 %v1268_v10, %v2910_v9  ;;  %v1529_v4 = vadd.f32 %v1528_v49, %v1402_v58  ;;  %v1414_v49 = vmul.f32 %v2530_v32, %v2530_v32  ;;  %v1415_v9 = vmul.f32 %v2536_v53, %v2536_v53 }
 0x22c   : > { %v1270_v13 = vadd.f32 %v1269_v56, %v2911_v36  ;;  %v1530_v33 = vadd.f32 %v1529_v4, %v1403_v21  ;;  %v1416_v4 = vmul.f32 %v2554_v7, %v2554_v7 }
 0x22e   : > { %v1271_v20 = vadd.f32 %v1270_v13, %v2912_v17  ;;  %v1531_v23 = vadd.f32 %v1530_v33, %v1404_v35  ;;  %v1417_v13 = vmul.f32 %v2577_v31, %v2577_v31 }
 0x230   : > { %v1272_v29 = vadd.f32 %v1271_v20, %v2913_v43  ;;  %v1532_v57 = vadd.f32 %v1531_v23, %v1405_v14  ;;  %v1418_v14 = vmul.f32 %v2598_v41, %v2598_v41 }
 0x232   : > { %v1273_v11 = vadd.f32 %v1272_v29, %v2914_v26  ;;  %v1533_v38 = vadd.f32 %v1532_v57, %v1406_v3  ;;  %v1420_v3 = vmul.f32 %v2636_v0, %v2636_v0  ;;  %v1421_v57 = vmul.f32 %v2652_v63, %v2652_v63 }
 0x234   : > { %v1274_v50 = vadd.f32 %v1273_v11, %v2915_v22  ;;  %v1534_v45 = vadd.f32 %v1533_v38, %v1407_v27  ;;  %v1423_v22 = vmul.f32 %v2681_v51, %v2681_v51 }
 0x236   : > { %v1275_v61 = vadd.f32 %v1274_v50, %v2916_v52  ;;  %v1535_v18 = vadd.f32 %v1534_v45, %v1408_v8  ;;  %v1424_v50 = vmul.f32 %v2698_v39, %v2698_v39  ;;  %v1425_v52 = vmul.f32 %v2715_v60, %v2715_v60 }
 0x238   : > { %v1276_v34 = vadd.f32 %v1275_v61, %v2917_v16  ;;  %v1536_v62 = vadd.f32 %v1535_v18, %v1409_v24  ;;  %v1426_v18 = vmul.f32 %v2732_v30, %v2732_v30 }
 0x23a   : > { %v1277_v47 = vadd.f32 %v1276_v34, %v2918_v15  ;;  %v1537_v12 = vadd.f32 %v1536_v62, %v1410_v19  ;;  %v1427_v34 = vmul.f32 %v2749_v6, %v2749_v6 }
 0x23c   : > { %v1278_v59 = vadd.f32 %v1277_v47, %v2919_v5  ;;  %v1538_v54 = vadd.f32 %v1537_v12, %v1411_v25 }
 0x23e   : > { %v1279_v46 = vadd.f32 %v1278_v59, %v2920_v40  ;;  %v1539_v28 = vadd.f32 %v1538_v54, %v1412_v48  ;;  %v1430_v48 = vmul.f32 %v1161_v44, %v1161_v44 }
 0x240   : > { %v1280_v10 = vadd.f32 %v1279_v46, %v2530_v32  ;;  %v1540_v58 = vadd.f32 %v1539_v28, %v1413_v2  ;;  %v1164_v32 = vpop.f32.mrf.mxu3 }
 0x242   : > { %v1541_v21 = vadd.f32 %v1540_v58, %v1414_v49  ;;  %v1281_v56 = vadd.f32 %v1280_v10, %v2536_v53  ;;  %v1419_v53 = vmul.f32 %v2617_v42, %v2617_v42 }
 0x244   : > { %v1282_v36 = vadd.f32 %v1281_v56, %v2554_v7  ;;  %v1542_v35 = vadd.f32 %v1541_v21, %v1415_v9 }
 0x246   : > { %v1283_v33 = vadd.f32 %v1282_v36, %v2577_v31  ;;  %v1543_v17 = vadd.f32 %v1542_v35, %v1416_v4 }
 0x248   : > { %v1284_v20 = vadd.f32 %v1283_v33, %v2598_v41  ;;  %v1544_v23 = vadd.f32 %v1543_v17, %v1417_v13  ;;  %v1422_v41 = vmul.f32 %v2662_v55, %v2662_v55 }
 0x24a   : > { %v1285_v43 = vadd.f32 %v1284_v20, %v2617_v42  ;;  %v1545_v7 = vadd.f32 %v1544_v23, %v1418_v14  ;;  %v1166_v42 = vpop.f32.mrf.mxu3 }
 0x24b   : > { %v1432_v46 = vmul.f32 %v1166_v42, %v1166_v42 }
 0x24c   : > { %v1286_v29 = vadd.f32 %v1285_v43, %v2636_v0  ;;  %v1546_v31 = vadd.f32 %v1545_v7, %v1419_v53 }
 0x24e   : > { %v1287_v26 = vadd.f32 %v1286_v29, %v2652_v63  ;;  %v1547_v27 = vadd.f32 %v1546_v31, %v1420_v3 }
 0x250   : > { %v1288_v11 = vadd.f32 %v1287_v26, %v2662_v55  ;;  %v1548_v38 = vadd.f32 %v1547_v27, %v1421_v57 }
 0x252   : > { %v1289_v8 = vadd.f32 %v1288_v11, %v2681_v51  ;;  %v1549_v0 = vadd.f32 %v1548_v38, %v1422_v41 }
 0x254   : > { %v1290_v45 = vadd.f32 %v1289_v8, %v2698_v39  ;;  %v1550_v63 = vadd.f32 %v1549_v0, %v1423_v22  ;;  %v1169_v39 = vpop.f32.mrf.mxu3 }
 0x256   : > { %v1291_v24 = vadd.f32 %v1290_v45, %v2715_v60  ;;  %v1551_v55 = vadd.f32 %v1550_v63, %v1424_v50  ;;  %v1428_v60 = vmul.f32 %v2751_v1, %v2751_v1 }
 0x258   : > { %v1292_v61 = vadd.f32 %v1291_v24, %v2732_v30  ;;  %v1552_v16 = vadd.f32 %v1551_v55, %v1425_v52  ;;  %v1429_v30 = vmul.f32 %v2768_v37, %v2768_v37 }
 0x25a   : > { %v1553_v51 = vadd.f32 %v1552_v16, %v1426_v18  ;;  %v1293_v19 = vadd.f32 %v1292_v61, %v2749_v6  ;;  %v1431_v6 = vmul.f32 %v1164_v32, %v1164_v32 }
 0x25c   : > { %v1554_v62 = vadd.f32 %v1553_v51, %v1427_v34  ;;  %v1294_v15 = vadd.f32 %v1293_v19, %v2751_v1  ;;  %v1171_v28 = vpop.f32.mrf.mxu3  ;;  %v1433_v1 = vmul.f32 %v1169_v39, %v1169_v39 }
 0x25d   : > { %v1434_v21 = vmul.f32 %v1171_v28, %v1171_v28 }
 0x25e   : > { %v1555_v25 = vadd.f32 %v1554_v62, %v1428_v60  ;;  %v1295_v47 = vadd.f32 %v1294_v15, %v2768_v37 }
 0x260   : > { %v1556_v12 = vadd.f32 %v1555_v25, %v1429_v30  ;;  %v1296_v5 = vadd.f32 %v1295_v47, %v1161_v44  ;;  %v1568_v44 = vlaneseq }
 0x262   : > { %v1557_v59 = vadd.f32 %v1556_v12, %v1430_v48  ;;  %v1297_v54 = vadd.f32 %v1296_v5, %v1164_v32  ;;  %v1569_v32 = vshrl.u32 %v1568_v44, 7 }
 0x264   : > { %v1558_v40 = vadd.f32 %v1557_v59, %v1431_v6  ;;  %v1298_v2 = vadd.f32 %v1297_v54, %v1166_v42  ;;  %vm1570_vm2 = vcmp.eq.s32.totalorder %v1569_v32, 0  ;;  %vm1572_vm3 = vcmp.eq.s32.totalorder %v1569_v32, 1 }
 0x266   : > { %v1559_v49 = vadd.f32 %v1558_v40, %v1432_v46  ;;  %v1299_v10 = vadd.f32 %v1298_v2, %v1169_v39 }
 0x268   : > { %v1560_v58 = vadd.f32 %v1559_v49, %v1433_v1  ;;  %v1300_v9 = vadd.f32 %v1299_v10, %v1171_v28 }
 0x26a   : > { %v1301_v56 = vrot.slane %v1300_v9, 4  ;;  %v1561_v37 = vadd.f32 %v1560_v58, %v1434_v21 }
 0x26c   : > { %v1302_v4 = vadd.f32 %v1301_v56, %v1300_v9  ;;  %v1562_v36 = vrot.slane %v1561_v37, 4 }
 0x26e   : > { %v1303_v35 = vrot.slane %v1302_v4, 2  ;;  %v1563_v13 = vadd.f32 %v1562_v36, %v1561_v37 }
 0x270   : > { %v1304_v33 = vadd.f32 %v1303_v35, %v1302_v4  ;;  %v1564_v17 = vrot.slane %v1563_v13, 2 }
 0x272   : > { %v1305_v14 = vrot.slane %v1304_v33, 1  ;;  %v1565_v20 = vadd.f32 %v1564_v17, %v1563_v13 }
 0x274   : > { %v1306_v23 = vadd.f32 %v1305_v14, %v1304_v33  ;;  %v1566_v53 = vrot.slane %v1565_v20, 1 }
 0x276   : > { %v1567_v43 = vadd.f32 %v1566_v53, %v1565_v20  ;;  %v1571_v7 = vsel %vm1570_vm2, %v1306_v23, 0.0 }
 0x278   : > { %v1573_v3 = vsel %vm1572_vm3, %v1567_v43, 0.0 }
 0x279   : > { %v1574_v29 = vadd.f32 %v1573_v3, %v1571_v7 }
 0x27b   : > { %1575 = vst [vmem:[%s137_s29] sm:$0xff] %v1574_v29 }
 0x27c   : > { %2168 = shalt.err (!%p2165_p3)
}
 0x27d   : > { %2102 = dma.vmem_to_hbm [thread:$0]  (%p2258_p5), %s1590_s30, 128, %s1592_s3, %s1577_s13  }
 0x27e PF: > { %p2108_p4 = scmp.ge.s32.totalorder %s2203_s12, 2  ;;  %s1603_s17 = sand.u32 1, %s2191_s9  }
 0x27f   : > { %s1604_s21 = scalar_lea.sflag [#allocation3], %s1603_s17 }
 0x280   : > { %p2105_p7 = pnand %p2108_p4, %p2262_p6 }
 0x282   : > { %p2106_p8 = pneg %p2105_p7 }
 0x284   : > { %2186 = dma.done.wait (%p2106_p8), %s1604_s21, 128  }
 0x285   : > { %2188 = vsyncadd (%p2106_p8), %s1604_s21, 4294967168  ;;  %p12_p9 = scmp.ge.s32.totalorder %s2245_s15, 4   ;;  %s2921_s9 = smov %s2195_s10 }
 0x286   : > { %s2922_s10 = smov %s2199_s11  ;;  %s2923_s11 = smov %s2256_s18 }
 0x287   : > { %s2924_s12 = smov %s2245_s15  ;;  %14 = sbr.rel (!%p12_p9) target bundleno = 3 (0x3), region = 63 }
 0x28c   :  { %1610 = vsyncpa [#allocation3], 1 }
 0x28d   :  { %1612 = vsyncpa [#allocation3 + $0x1], 1 }

</bundles_post_ra>
